<compile_context>
chip_gen: v5e
topology: v5e:2x2
jax: 0.10.0
libtpu: 0.0.40
codegen_flags: <defaults>
</compile_context>

<pallas_src>
import math
import functools

import jax
import jax.numpy as jnp
from jax.experimental import pallas as pl
from jax.experimental.pallas import tpu as pltpu


def _round_up(a, b):
    return ((a + b - 1) // b) * b


def _cdiv(a, b):
    return (a + b - 1) // b


def _arcface_kernel(logits_ref, labels_ref, out_ref, *, s, cos_m, sin_m,
                    tile_c, col_grid_axis):
    # logits_ref: (tile_n, tile_c)   labels_ref: (tile_n, 1) int32
    if col_grid_axis is None:
        col_start = 0
    else:
        col_start = pl.program_id(col_grid_axis) * tile_c

    x = jnp.clip(logits_ref[...].astype(jnp.float32), -1.0, 1.0)
    lab = labels_ref[...]                                        # (tile_n, 1)

    col = jax.lax.broadcasted_iota(jnp.int32, x.shape, 1) + col_start
    is_target = jnp.logical_and(col == lab, lab != -1)           # (tile_n, tile_c)

    # cos(arccos(x) + m) = x*cos(m) - sqrt(1 - x^2)*sin(m)
    sin_theta = jnp.sqrt(jnp.maximum(1.0 - x * x, 0.0))
    margined = x * cos_m - sin_theta * sin_m

    out_ref[...] = (jnp.where(is_target, margined, x) * s).astype(out_ref.dtype)


def arcface(logits, labels, *, s=64.0, margin=0.5, tile_n=None, tile_c=None):
    """logits: (N, C) cosine similarities; labels: (N,) int, -1 == no target."""
    N, C = logits.shape

    # ---- tile selection: lane-dense, ~4 MiB f32 per logits tile --------------
    budget_elems = (4 << 20) // 4            # 4 MiB of f32 per tile
    Cp = _round_up(C, 128)

    if tile_c is None:
        # Prefer a full class-row strip when it fits with at least 8 rows.
        tile_c = min(Cp, max(128, ((budget_elems // 8) // 128) * 128))
    else:
        tile_c = max(128, _round_up(tile_c, 128))
    tile_c = min(tile_c, Cp)

    if tile_n is None:
        tile_n = max(8, ((budget_elems // tile_c) // 8) * 8)
    else:
        tile_n = max(8, _round_up(tile_n, 8))
    tile_n = min(tile_n, _round_up(N, 8))

    grid_c = _cdiv(C, tile_c)
    grid_n = _cdiv(N, tile_n)

    # Megacore occupancy (v7x: 2 TCs): make sure there are enough tiles.
    target_tiles = 8
    if grid_n * grid_c < target_tiles and tile_n > 8:
        want_rows = _cdiv(target_tiles, grid_c)
        tile_n = max(8, min(tile_n, _round_up(_cdiv(N, want_rows), 8)))
        grid_n = _cdiv(N, tile_n)

    # ---- labels: pad (tiny) so edge-tile mask math is well defined -----------
    labels2d = labels.astype(jnp.int32).reshape(N, 1)
    n_rows_padded = grid_n * tile_n
    if n_rows_padded != N:
        labels2d = jnp.full((n_rows_padded, 1), -1, jnp.int32).at[:N, :].set(labels2d)

    kernel = functools.partial(
        _arcface_kernel,
        s=float(s),
        cos_m=math.cos(margin),
        sin_m=math.sin(margin),
        tile_c=tile_c,
        col_grid_axis=None if grid_c == 1 else 1,
    )

    if grid_c == 1:
        # Full class-row strip: 1-D grid over row tiles, fully contiguous DMAs.
        grid = (grid_n,)
        logits_spec = pl.BlockSpec((tile_n, tile_c), lambda i: (i, 0))
        labels_spec = pl.BlockSpec((tile_n, 1), lambda i: (i, 0))
        out_spec = pl.BlockSpec((tile_n, tile_c), lambda i: (i, 0))
        dims = ("parallel",)
    else:
        grid = (grid_n, grid_c)
        logits_spec = pl.BlockSpec((tile_n, tile_c), lambda i, j: (i, j))
        labels_spec = pl.BlockSpec((tile_n, 1), lambda i, j: (i, 0))
        out_spec = pl.BlockSpec((tile_n, tile_c), lambda i, j: (i, j))
        dims = ("parallel", "parallel")

    # VMEM budget: in + out tiles, double-buffered, plus labels/slack.
    tile_bytes = tile_n * tile_c * 4
    vmem_limit = int(min(96 << 20, max(32 << 20, 4 * tile_bytes + (2 << 20))))

    cost = pl.CostEstimate(
        flops=8 * N * C,
        transcendentals=N * C,            # one sqrt per element
        bytes_accessed=8 * N * C + 4 * N,  # f32 read + write, plus labels
    )

    return pl.pallas_call(
        kernel,
        out_shape=jax.ShapeDtypeStruct((N, C), logits.dtype),
        grid_spec=pltpu.PrefetchScalarGridSpec(
            num_scalar_prefetch=0,
            grid=grid,
            in_specs=[logits_spec, labels_spec],
            out_specs=out_spec,
        ),
        compiler_params=pltpu.CompilerParams(
            dimension_semantics=dims,
            vmem_limit_bytes=vmem_limit,
        ),
        cost_estimate=cost,
    )(logits, labels2d)


def arcface_ref(logits, labels, *, s=64.0, margin=0.5):
    N, C = logits.shape
    col = jnp.arange(C, dtype=jnp.int32)[None, :]
    lab = labels.astype(jnp.int32)[:, None]
    is_target = (col == lab) & (lab != -1)
    x = jnp.clip(logits.astype(jnp.float32), -1.0, 1.0)
    theta = jnp.arccos(x)
    theta = jnp.where(is_target, theta + margin, theta)
    return (jnp.cos(theta) * s).astype(logits.dtype)


if __name__ == "__main__":
    key = jax.random.PRNGKey(0)
    k1, k2, k3, k4, k5, k6 = jax.random.split(key, 6)

    # Case 1: lane/sublane-aligned small shape (single full-row-strip tile).
    N, C = 8, 256
    logits = jax.random.uniform(k1, (N, C), jnp.float32, minval=-0.99, maxval=0.99)
    labels = jax.random.randint(k2, (N,), 0, C, dtype=jnp.int32).at[3].set(-1)
    out = jax.block_until_ready(arcface(logits, labels, s=64.0, margin=0.5))
    ref = arcface_ref(logits, labels, s=64.0, margin=0.5)
    assert out.shape == (N, C)
    assert jnp.allclose(out, ref, atol=1e-3, rtol=1e-3), "mismatch (aligned)"

    # Case 2: ragged shape — exercises masked edge tiles (no wrapper padding).
    N2, C2 = 6, 200
    logits2 = jax.random.uniform(k3, (N2, C2), jnp.float32, minval=-0.99, maxval=0.99)
    labels2 = jax.random.randint(k4, (N2,), 0, C2, dtype=jnp.int32).at[0].set(-1)
    out2 = jax.block_until_ready(arcface(logits2, labels2, s=64.0, margin=0.5))
    ref2 = arcface_ref(logits2, labels2, s=64.0, margin=0.5)
    assert out2.shape == (N2, C2)
    assert jnp.allclose(out2, ref2, atol=1e-3, rtol=1e-3), "mismatch (ragged)"

    # Case 3: force a 2-D grid (multiple column tiles) to exercise col indexing.
    N3, C3 = 16, 384
    logits3 = jax.random.uniform(k5, (N3, C3), jnp.float32, minval=-0.99, maxval=0.99)
    labels3 = jax.random.randint(k6, (N3,), 0, C3, dtype=jnp.int32).at[5].set(-1)
    out3 = jax.block_until_ready(
        arcface(logits3, labels3, s=64.0, margin=0.5, tile_n=8, tile_c=128))
    ref3 = arcface_ref(logits3, labels3, s=64.0, margin=0.5)
    assert out3.shape == (N3, C3)
    assert jnp.allclose(out3, ref3, atol=1e-3, rtol=1e-3), "mismatch (2-D grid)"

    print("KERNEL_OK")
</pallas_src>

<mosaic_0001>
module attributes {stable_mosaic.version = 11 : i64} {
  func.func @_arcface_kernel(%arg0: i32, %arg1: memref<8x256xf32, #tpu.memory_space<vmem>>, %arg2: memref<8x1xi32, #tpu.memory_space<vmem>>, %arg3: memref<8x256xf32, #tpu.memory_space<vmem>>) attributes {dimension_semantics = [#tpu.dimension_semantics<parallel>], iteration_bounds = array<i64: 1>, scalar_prefetch = 0 : i64, scratch_operands = 0 : i64, tpu.core_type = #tpu.core_type<tc>, window_params = [{transform_indices = @transform_0, window_bounds = array<i64: 8, 256>}, {transform_indices = @transform_1, window_bounds = array<i64: 8, 1>}, {transform_indices = @transform_2, window_bounds = array<i64: 8, 256>}]} {
    %c0 = arith.constant 0 : index
    %c0_0 = arith.constant 0 : index
    %0 = vector.load %arg1[%c0, %c0_0] : memref<8x256xf32, #tpu.memory_space<vmem>>, vector<8x256xf32>
    %cst = arith.constant -1.000000e+00 : f32
    %cst_1 = arith.constant 1.000000e+00 : f32
    %1 = vector.broadcast %cst : f32 to vector<8x256xf32>
    %2 = arith.maximumf %1, %0 : vector<8x256xf32>
    %3 = vector.broadcast %cst_1 : f32 to vector<8x256xf32>
    %4 = arith.minimumf %3, %2 : vector<8x256xf32>
    %c0_2 = arith.constant 0 : index
    %c0_3 = arith.constant 0 : index
    %5 = vector.load %arg2[%c0_2, %c0_3] : memref<8x1xi32, #tpu.memory_space<vmem>>, vector<8x1xi32>
    %6 = tpu.iota {dimensions = array<i32: 1>} : vector<8x256xi32>
    %c0_i32 = arith.constant 0 : i32
    %7 = vector.broadcast %c0_i32 : i32 to vector<8x256xi32>
    %8 = arith.addi %6, %7 : vector<8x256xi32>
    %9 = vector.broadcast %5 : vector<8x1xi32> to vector<8x256xi32>
    %10 = arith.cmpi eq, %8, %9 : vector<8x256xi32>
    %c-1_i32 = arith.constant -1 : i32
    %11 = vector.broadcast %c-1_i32 : i32 to vector<8x1xi32>
    %12 = arith.cmpi ne, %5, %11 : vector<8x1xi32>
    %13 = vector.broadcast %12 : vector<8x1xi1> to vector<8x256xi1>
    %14 = arith.andi %10, %13 : vector<8x256xi1>
    %15 = arith.mulf %4, %4 : vector<8x256xf32>
    %cst_4 = arith.constant 1.000000e+00 : f32
    %16 = vector.broadcast %cst_4 : f32 to vector<8x256xf32>
    %17 = arith.subf %16, %15 : vector<8x256xf32>
    %cst_5 = arith.constant 0.000000e+00 : f32
    %18 = vector.broadcast %cst_5 : f32 to vector<8x256xf32>
    %19 = arith.maximumf %17, %18 : vector<8x256xf32>
    %20 = math.sqrt %19 : vector<8x256xf32>
    %cst_6 = arith.constant 0.87758255 : f32
    %21 = vector.broadcast %cst_6 : f32 to vector<8x256xf32>
    %22 = arith.mulf %4, %21 : vector<8x256xf32>
    %cst_7 = arith.constant 0.47942555 : f32
    %23 = vector.broadcast %cst_7 : f32 to vector<8x256xf32>
    %24 = arith.mulf %20, %23 : vector<8x256xf32>
    %25 = arith.subf %22, %24 : vector<8x256xf32>
    %26 = arith.select %14, %25, %4 : vector<8x256xi1>, vector<8x256xf32>
    %cst_8 = arith.constant 6.400000e+01 : f32
    %27 = vector.broadcast %cst_8 : f32 to vector<8x256xf32>
    %28 = arith.mulf %26, %27 : vector<8x256xf32>
    %c0_9 = arith.constant 0 : index
    %c0_10 = arith.constant 0 : index
    %29 = vector.load %arg3[%c0_9, %c0_10] : memref<8x256xf32, #tpu.memory_space<vmem>>, vector<8x256xf32>
    tpu.vector_store %arg3[%c0_9, %c0_10], %28 {strides = array<i32>} : memref<8x256xf32, #tpu.memory_space<vmem>>, vector<8x256xf32>,
    return
  }
  func.func @transform_0(%arg0: i32) -> (i32, i32) {
    %c0_i32 = arith.constant 0 : i32
    %c0_i32_0 = arith.constant 0 : i32
    return %arg0, %c0_i32 : i32, i32
  }
  func.func @transform_1(%arg0: i32) -> (i32, i32) {
    %c0_i32 = arith.constant 0 : i32
    %c0_i32_0 = arith.constant 0 : i32
    return %arg0, %c0_i32 : i32, i32
  }
  func.func @transform_2(%arg0: i32) -> (i32, i32) {
    %c0_i32 = arith.constant 0 : i32
    %c0_i32_0 = arith.constant 0 : i32
    return %arg0, %c0_i32 : i32, i32
  }
}

</mosaic_0001>

<bundles_post_ra>
// kernel: tpu_custom_call.1
= control target key start
LH: loop header
LB: loop body
LE: loop exit
PB: predicated region body
PF: predicated region fallthrough
CT: control target
= control target key end

     0   :  { %7 = vsyncpa [#allocation3], 0  ;;  %s197_s0 = inlined_call_operand.hbm [shape: f32[8,256], index: 0, kind: input, shape index: {}]   ;;  %s198_s1 = inlined_call_operand.vmem [shape: s32[8,1], index: 1, kind: input, shape index: {}]   ;;  %s199_s2 = inlined_call_operand.hbm [shape: f32[8,256], index: 2, kind: output, shape index: {}]  }
   0x1   :  { %8 = vsyncpa [#allocation4], 0  ;;  %s14_s11 = sshll.u32 %s197_s0, 4  ;;  %s170_s12 = smov [#allocation2]   ;;  %s15_s11 = int_to_ptr.hbm [resolvable:$true] %s14_s11 }
   0x2   :  { %s16_s13 = sshll.u32 %s170_s12, 4  ;;  %s17_s13 = int_to_ptr.vmem [resolvable:$true] %s16_s13 }
   0x3   :  { %19 = dma.hbm_to_vmem [thread:$0]  %s15_s11, 256, %s17_s13, [#allocation3]  }
   0x4   :  { %166 = dma.done.wait [#allocation3], 256  }
   0x5   :  { %167 = vsyncadd [#allocation3], 4294967040  ;;  %v171_v0 = vmov 0   ;;  %v32_v1 = vld [vmem:[%s198_s1] sm:$0xff]  ;;  %v27_v4 = vld [vmem:[#allocation2 + $0x8] sm:$0xff]  ;;  %v33_v30 = vlaneseq  ;;  %s172_s0 = smov [#allocation5]  }
   0x6   :  { %113 = vset.pattern.permute.xlu0 %v171_v0  ;;  %vm41_vm0 = vcmp.ne.s32.totalorder %v32_v1, 4294967295  ;;  %v26_v3 = vld [vmem:[#allocation2] sm:$0xff]  ;;  %v109_v6 = vclamps-f32 %v27_v4, 1.0  ;;  %s96_s1 = sshll.u32 %s172_s0, 4  ;;  %s98_s18 = sshll.u32 %s199_s2, 4  ;;  %s97_s1 = int_to_ptr.vmem [resolvable:$true] %s96_s1  ;;  %s99_s18 = int_to_ptr.hbm [resolvable:$true] %s98_s18 }
   0x7   :  { %37 = vperm.xlu0 %113, %v32_v1   ;;  %v42_v2 = vsel %vm41_vm0, 1, %v171_v0  ;;  %v108_v5 = vclamps-f32 %v26_v3, 1.0  ;;  %v34_v35 = vand.u32 127, %v33_v30 }
   0x8   :  { %v50_v8 = vmul.f32 %v109_v6, %v109_v6  ;;  %v80_v38 = vmul.f32 0.87758255, %v109_v6 }
   0x9   :  { %v49_v7 = vmul.f32 %v108_v5, %v108_v5  ;;  %v79_v36 = vmul.f32 0.87758255, %v108_v5  ;;  %v35_v40 = vadd.s32 128, %v34_v35 }
   0xa   :  { %v52_v10 = vsub.f32 1.0, %v50_v8 }
   0xb   :  { %v51_v9 = vsub.f32 1.0, %v49_v7 }
   0xc   :  { %v54_v12 = vmax.f32 %v52_v10, 0.0 }
   0xd   :  { %v53_v11 = vmax.f32 %v51_v9, 0.0 }
   0xe   :  { %vm74_vm2 = vcmp.eq.f32.partialorder %v54_v12, inf  ;;  %v77_v29 = vand.u32 2147483648, %v54_v12  ;;  %vm76_vm4 = vcmp.eq.f32.partialorder %v54_v12, 0.0 }
   0xf   :  { %44 = vperm.xlu0 %113, %v42_v2   ;;  %114 = vrsqrt.f32 %v53_v11  ;;  %vm62_vm1 = vcmp.eq.f32.partialorder %v53_v11, inf  ;;  %v65_v27 = vand.u32 2147483648, %v53_v11  ;;  %vm64_vm3 = vcmp.eq.f32.partialorder %v53_v11, 0.0 }
  0x10   :  { %116 = vrsqrt.f32 %v54_v12 }
  0x15   :  { %v115_v13 = vpop.eup %114 }
  0x16   :  { %v117_v14 = vpop.eup %116  ;;  %v56_v15 = vmul.f32 %v115_v13, %v53_v11 }
  0x17   :  { %v68_v16 = vmul.f32 %v117_v14, %v54_v12 }
  0x18   :  { %v57_v17 = vmul.f32 %v115_v13, %v56_v15 }
  0x19   :  { %v69_v18 = vmul.f32 %v117_v14, %v68_v16 }
  0x1a   :  { %v58_v19 = vmul.f32 0.5, %v57_v17 }
  0x1b   :  { %v70_v20 = vmul.f32 0.5, %v69_v18 }
  0x1c   :  { %v59_v21 = vsub.f32 1.5, %v58_v19 }
  0x1d   :  { %v71_v22 = vsub.f32 1.5, %v70_v20 }
  0x1e   :  { %v60_v23 = vmul.f32 %v115_v13, %v59_v21 }
  0x1f   :  { %v72_v24 = vmul.f32 %v117_v14, %v71_v22 }
  0x20   :  { %v61_v25 = vmul.f32 %v60_v23, %v53_v11 }
  0x21   :  { %v73_v26 = vmul.f32 %v72_v24, %v54_v12 }
  0x22   :  { %v63_v28 = vsel %vm62_vm1, %v53_v11, %v61_v25 }
  0x23   :  { %v75_v31 = vsel %vm74_vm2, %v54_v12, %v73_v26  ;;  %v66_v33 = vsel %vm64_vm3, %v65_v27, %v63_v28 }
  0x24   :  { %v78_v34 = vsel %vm76_vm4, %v77_v29, %v75_v31  ;;  %v81_v37 = vmul.f32 0.47942555, %v66_v33 }
  0x25   :  { %v82_v39 = vmul.f32 0.47942555, %v78_v34 }
  0x26   :  { %v83_v41 = vsub.f32 %v79_v36, %v81_v37 }
  0x27   :  { %v84_v43 = vsub.f32 %v80_v38, %v82_v39 }
  0x79   :  { %v38_v32 = vpop.permute.xlu0 %37 }
  0x7a   :  { %vm39_vm5 = vcmp.eq.s32.totalorder %v34_v35, %v38_v32  ;;  %vm40_vm7 = vcmp.eq.s32.totalorder %v35_v40, %v38_v32 }
  0x81   :  { %v45_v42 = vpop.permute.xlu0 %44 }
  0x82   :  { %vm46_vm6 = vcmp.eq.s32.totalorder %v45_v42, 1 }
  0x83   :  { %vm47_vm8 = vmand %vm39_vm5, %vm46_vm6 }
  0x84   :  { %vm48_vm9 = vmand %vm40_vm7, %vm46_vm6  ;;  %v85_v44 = vsel %vm47_vm8, %v83_v41, %v108_v5 }
  0x85   :  { %v86_v45 = vsel %vm48_vm9, %v84_v43, %v109_v6  ;;  %v87_v46 = vmul.f32 64.0, %v85_v44 }
  0x86   :  { %v88_v47 = vmul.f32 64.0, %v86_v45 }
  0x87   :  { %89 = vst [vmem:[#allocation5] sm:$0xff] %v87_v46 }
  0x88   :  { %90 = vst [vmem:[#allocation5 + $0x8] sm:$0xff] %v88_v47 }
  0x89   :  { %101 = dma.vmem_to_hbm [thread:$0]  %s97_s1, 256, %s99_s18, [#allocation4]  }
  0x8a   :  { %168 = dma.done.wait [#allocation4], 256  }
  0x8b   :  { %169 = vsyncadd [#allocation4], 4294967040 }
  0x8c   :  { %106 = vsyncpa [#allocation3], 1 }
  0x8d   :  { %107 = vsyncpa [#allocation4], 1 }

</bundles_post_ra>
